<compile_context>
chip_gen: v6e
topology: v6e:2x2x1
jax: 0.10.0
libtpu: 0.0.40
codegen_flags: <defaults>
</compile_context>

<pallas_src>
import jax
import jax.numpy as jnp
from jax import lax
from jax.experimental import pallas as pl
from jax.experimental.pallas import tpu as pltpu


_VMEM_LIMIT_BYTES = 48 * 1024 * 1024    # > scoped defaults, safe on v7x (64 MiB phys)
_VMEM_TILE_BUDGET = 32 * 1024 * 1024    # double-buffered tiles + f32 intermediates
_TARGET_X_BYTES_PER_STEP = 2 * 1024 * 1024


def head_layer_kernel(x_ref, w_ref, b_ref, o_ref):
    """One grid step = TN batch images x one lane-dense spatial tile.

    x_ref : VMEM (B_br, TN, C_in, thw)   activations, spatial on the lane axis
    w_ref : VMEM (B_br, C_out, C_in)     effective (alpha/beta-folded) weights
    b_ref : VMEM (C_out, 1)              effective (alpha/beta-folded) bias
    o_ref : VMEM (TN, C_out, thw)        output tile (lane-dense)
    """
    n_branches = x_ref.shape[0]
    tn = x_ref.shape[1]
    bias = b_ref[...]                     # (C_out, 1), hoisted once

    def compute_one(n):
        # Branch reduction is tiny and static -> unrolled Python loop of dots.
        acc = jnp.dot(w_ref[0], x_ref[0, n], preferred_element_type=jnp.float32)
        for br in range(1, n_branches):
            acc = acc + jnp.dot(w_ref[br], x_ref[br, n],
                                preferred_element_type=jnp.float32)
        o_ref[n] = (acc + bias).astype(o_ref.dtype)

    if tn <= 8:
        # short fixed trip-count: fully static (best LLO visibility)
        for n in range(tn):
            compute_one(n)
    else:
        def body(n, carry):
            compute_one(n)
            return carry
        lax.fori_loop(0, tn, body, 0)


def _round_up(v, m):
    return -(-v // m) * m


def _pick_tiles(N, HW, B_br, C_in, C_out, in_itemsize, out_itemsize):
    """Choose (TN, thw): lane-dense spatial tile + batch-image blocking.

    Goal: >= ~2 MiB of activations moved per grid step (amortize the ~0.35us
    per-step overhead) while keeping double-buffered x/out tiles plus the f32
    intermediates under the VMEM budget (sized for v7x's 64 MiB physical).
    """
    def pad8(c):
        return _round_up(max(c, 1), 8)

    def vmem_per_image(thw):
        x_vmem = B_br * pad8(C_in) * thw * max(in_itemsize, 4)   # sublane padding
        o_vmem = pad8(C_out) * thw * max(out_itemsize, 4)
        acc_vmem = pad8(C_out) * thw * 4                         # f32 accumulator
        return 2 * (x_vmem + o_vmem) + 2 * acc_vmem

    # Spatial tile: full H*W whenever it fits; otherwise shrink by halving
    # (keeps thw a multiple of 128 that divides HW -> lane-dense stores).
    thw = HW
    if HW % 128 == 0:
        while vmem_per_image(thw) > _VMEM_TILE_BUDGET and thw % 256 == 0:
            thw //= 2

    per_img = vmem_per_image(thw)
    x_hbm_per_img = B_br * C_in * thw * in_itemsize
    tn_cap = max(1, min(
        N,
        _VMEM_TILE_BUDGET // max(per_img, 1),
        max(1, _TARGET_X_BYTES_PER_STEP // max(x_hbm_per_img, 1))))
    tn = 1
    for d in range(1, int(tn_cap) + 1):   # largest divisor of N <= cap
        if N % d == 0:
            tn = d
    return tn, thw


def head_layer_forward(inputs_nchw, betas, alphas, head_index, head_sub_obj,
                       conv_w, conv_b, softmax_temp=1.0, out_dtype=None,
                       tn=None, thw=None):
    """Pallas implementation of HeadLayer.forward.

    inputs_nchw : (B_br, N, C_in, H, W)  per-branch inputs (same shape)
    betas       : (B_br,)
    alphas      : (B_br, A)
    head_index  : (B_br, K) int32        branch_indices per branch
    head_sub_obj: (B_br, A)
    conv_w      : (B_br, K, C_in, C_out) per-op 1x1 conv weights
    conv_b      : (B_br, K, C_out)
    returns (out NCHW (N, C_out, H, W), count_sub_obj (B_br,))
    """
    B_br, N, C_in, H, W = inputs_nchw.shape
    C_out = conv_w.shape[-1]
    HW = H * W
    in_dtype = inputs_nchw.dtype
    if out_dtype is None:
        out_dtype = in_dtype   # pass bf16 activations to halve in+out HBM bytes

    # --- scalar glue (tiny, stays in JAX) --------------------------------
    gathered = jnp.take_along_axis(alphas, head_index, axis=1)        # (B_br, K)
    op_weights = jax.nn.softmax(gathered / softmax_temp, axis=-1)     # (B_br, K)
    coef = (betas[:, None] * op_weights).astype(jnp.float32)          # (B_br, K)

    sub = jnp.take_along_axis(head_sub_obj, head_index, axis=1)       # (B_br, K)
    count_sub_obj = jnp.sum(op_weights * sub, axis=-1)                # (B_br,)

    # --- fold the K (op) reduction into effective weights (tiny tensors) --
    # W_eff^T[b] = sum_k coef[b,k] * conv_w[b,k]^T     -> (B_br, C_out, C_in)
    # b_eff      = sum_{b,k} coef[b,k] * conv_b[b,k]   -> (C_out, 1)
    w_eff_t = jnp.einsum('bk,bkio->boi', coef, conv_w.astype(jnp.float32))
    w_eff_t = w_eff_t.astype(in_dtype)     # match matmul operand dtype (f32 acc)
    b_eff = jnp.einsum('bk,bko->o', coef, conv_b.astype(jnp.float32))
    b_eff = b_eff.reshape(C_out, 1)

    # Free reshape (no transpose, no copy): spatial goes on the lane axis.
    x = inputs_nchw.reshape(B_br, N, C_in, HW)

    auto_tn, auto_thw = _pick_tiles(N, HW, B_br, C_in, C_out,
                                    jnp.dtype(in_dtype).itemsize,
                                    jnp.dtype(out_dtype).itemsize)
    if tn is None:
        tn = auto_tn
    if thw is None:
        thw = auto_thw
    # Lane-dense tiling: full H*W, or a multiple of 128 that divides H*W.
    assert HW % thw == 0 and (thw == HW or thw % 128 == 0), (
        "spatial tile must be lane-dense (multiple of 128 dividing H*W, or "
        "H*W itself); pad spatially upstream if H*W is awkward")
    assert N % tn == 0

    out = pl.pallas_call(
        head_layer_kernel,
        out_shape=jax.ShapeDtypeStruct((N, C_out, HW), out_dtype),
        grid_spec=pltpu.PrefetchScalarGridSpec(
            num_scalar_prefetch=0,
            grid=(N // tn, HW // thw),
            in_specs=[
                # activations: TN images x all branches per step
                pl.BlockSpec((B_br, tn, C_in, thw),
                             lambda n, t: (0, n, 0, t)),
                # effective weights / bias: whole (tiny) tensors, resident
                pl.BlockSpec((B_br, C_out, C_in), lambda n, t: (0, 0, 0)),
                pl.BlockSpec((C_out, 1), lambda n, t: (0, 0)),
            ],
            out_specs=pl.BlockSpec((tn, C_out, thw),
                                   lambda n, t: (n, 0, t)),
        ),
        compiler_params=pltpu.CompilerParams(
            dimension_semantics=("parallel", "parallel"),
            vmem_limit_bytes=_VMEM_LIMIT_BYTES),
    )(x, w_eff_t, b_eff)

    out = out.reshape(N, C_out, H, W)   # free reshape, already NCHW
    return out, count_sub_obj


def head_layer_reference(inputs_nchw, betas, alphas, head_index, head_sub_obj,
                         conv_w, conv_b, softmax_temp=1.0):
    """Plain-JAX reference mirroring the PyTorch forward (NCHW)."""
    B_br = inputs_nchw.shape[0]
    K = head_index.shape[1]
    head_data, count_sub_obj = [], []
    for b in range(B_br):
        op_w = jax.nn.softmax(alphas[b][head_index[b]] / softmax_temp)
        acc = 0.0
        for k in range(K):
            y = jnp.einsum('nchw,cd->ndhw', inputs_nchw[b], conv_w[b, k])
            y = y + conv_b[b, k][None, :, None, None]
            acc = acc + op_w[k] * y
        head_data.append(acc)
        count_sub_obj.append(jnp.sum(op_w * head_sub_obj[b][head_index[b]]))
    total = sum(beta * d for beta, d in zip(betas, head_data))
    return total, jnp.stack(count_sub_obj)


if __name__ == "__main__":
    key = jax.random.PRNGKey(0)
    B_br, N, C_in, H, W = 2, 2, 4, 16, 16      # 2 head branches, NCHW inputs
    K, A, C_out = 3, 5, 8                      # 3 candidate ops, 5 alphas

    ks = jax.random.split(key, 6)
    inputs = jax.random.normal(ks[0], (B_br, N, C_in, H, W), jnp.float32)
    betas = jax.nn.softmax(jax.random.normal(ks[1], (B_br,), jnp.float32))
    alphas = jax.random.normal(ks[2], (B_br, A), jnp.float32)
    head_index = jnp.array([[0, 2, 4], [1, 3, 4]], dtype=jnp.int32)
    head_sub_obj = jax.random.uniform(ks[3], (B_br, A), jnp.float32)
    conv_w = 0.1 * jax.random.normal(ks[4], (B_br, K, C_in, C_out), jnp.float32)
    conv_b = 0.1 * jax.random.normal(ks[5], (B_br, K, C_out), jnp.float32)

    out, sub_obj = head_layer_forward(inputs, betas, alphas, head_index,
                                      head_sub_obj, conv_w, conv_b)
    out = jax.block_until_ready(out)
    sub_obj = jax.block_until_ready(sub_obj)

    ref_out, ref_sub = head_layer_reference(inputs, betas, alphas, head_index,
                                            head_sub_obj, conv_w, conv_b)
    assert out.shape == (N, C_out, H, W)
    assert jnp.allclose(out, ref_out, atol=1e-4, rtol=1e-4)
    assert jnp.allclose(sub_obj, ref_sub, atol=1e-5, rtol=1e-5)
    print("KERNEL_OK")
</pallas_src>

<mosaic_0001>
module attributes {stable_mosaic.version = 11 : i64} {
  func.func @head_layer_kernel(%arg0: i32, %arg1: i32, %arg2: memref<2x2x4x256xf32, #tpu.memory_space<vmem>>, %arg3: memref<2x8x4xf32, #tpu.memory_space<vmem>>, %arg4: memref<8x1xf32, #tpu.memory_space<vmem>>, %arg5: memref<2x8x256xf32, #tpu.memory_space<vmem>>) attributes {dimension_semantics = [#tpu.dimension_semantics<parallel>, #tpu.dimension_semantics<parallel>], iteration_bounds = array<i64: 1, 1>, scalar_prefetch = 0 : i64, scratch_operands = 0 : i64, tpu.core_type = #tpu.core_type<tc>, window_params = [{transform_indices = @transform_0, window_bounds = array<i64: 2, 2, 4, 256>}, {pipeline_mode = #tpu.pipeline_mode<synchronous>, transform_indices = @transform_1, window_bounds = array<i64: 2, 8, 4>}, {pipeline_mode = #tpu.pipeline_mode<synchronous>, transform_indices = @transform_2, window_bounds = array<i64: 8, 1>}, {transform_indices = @transform_3, window_bounds = array<i64: 2, 8, 256>}]} {
    %c0 = arith.constant 0 : index
    %c0_0 = arith.constant 0 : index
    %0 = vector.load %arg4[%c0, %c0_0] : memref<8x1xf32, #tpu.memory_space<vmem>>, vector<8x1xf32>
    %c0_1 = arith.constant 0 : index
    %c0_2 = arith.constant 0 : index
    %c0_3 = arith.constant 0 : index
    %1 = vector.load %arg3[%c0_1, %c0_2, %c0_3] : memref<2x8x4xf32, #tpu.memory_space<vmem>>, vector<1x8x4xf32>
    %2 = vector.shape_cast %1 : vector<1x8x4xf32> to vector<8x4xf32>
    %c0_4 = arith.constant 0 : index
    %c0_5 = arith.constant 0 : index
    %c0_6 = arith.constant 0 : index
    %c0_7 = arith.constant 0 : index
    %3 = vector.load %arg2[%c0_4, %c0_5, %c0_6, %c0_7] : memref<2x2x4x256xf32, #tpu.memory_space<vmem>>, vector<1x1x4x256xf32>
    %4 = vector.shape_cast %3 : vector<1x1x4x256xf32> to vector<4x256xf32>
    %cst = arith.constant dense<0.000000e+00> : vector<8x256xf32>
    %5 = tpu.matmul %2, %4, %cst {dimension_numbers = #tpu.dot_dimension_numbers<[1], [0], [0], [1], [0, 0, 1, 1], [], []>} : vector<8x4xf32>, vector<4x256xf32>, vector<8x256xf32> -> vector<8x256xf32>
    %c1 = arith.constant 1 : index
    %c0_8 = arith.constant 0 : index
    %c0_9 = arith.constant 0 : index
    %6 = vector.load %arg3[%c1, %c0_8, %c0_9] : memref<2x8x4xf32, #tpu.memory_space<vmem>>, vector<1x8x4xf32>
    %7 = vector.shape_cast %6 : vector<1x8x4xf32> to vector<8x4xf32>
    %c1_10 = arith.constant 1 : index
    %c0_11 = arith.constant 0 : index
    %c0_12 = arith.constant 0 : index
    %c0_13 = arith.constant 0 : index
    %8 = vector.load %arg2[%c1_10, %c0_11, %c0_12, %c0_13] : memref<2x2x4x256xf32, #tpu.memory_space<vmem>>, vector<1x1x4x256xf32>
    %9 = vector.shape_cast %8 : vector<1x1x4x256xf32> to vector<4x256xf32>
    %cst_14 = arith.constant dense<0.000000e+00> : vector<8x256xf32>
    %10 = tpu.matmul %7, %9, %cst_14 {dimension_numbers = #tpu.dot_dimension_numbers<[1], [0], [0], [1], [0, 0, 1, 1], [], []>} : vector<8x4xf32>, vector<4x256xf32>, vector<8x256xf32> -> vector<8x256xf32>
    %11 = arith.addf %5, %10 : vector<8x256xf32>
    %12 = vector.broadcast %0 : vector<8x1xf32> to vector<8x256xf32>
    %13 = arith.addf %11, %12 : vector<8x256xf32>
    %c0_15 = arith.constant 0 : index
    %c0_16 = arith.constant 0 : index
    %c0_17 = arith.constant 0 : index
    %14 = vector.load %arg5[%c0_15, %c0_16, %c0_17] : memref<2x8x256xf32, #tpu.memory_space<vmem>>, vector<1x8x256xf32>
    %15 = vector.shape_cast %14 : vector<1x8x256xf32> to vector<8x256xf32>
    %16 = vector.shape_cast %13 : vector<8x256xf32> to vector<1x8x256xf32>
    tpu.vector_store %arg5[%c0_15, %c0_16, %c0_17], %16 {strides = array<i32>} : memref<2x8x256xf32, #tpu.memory_space<vmem>>, vector<1x8x256xf32>,
    %c0_18 = arith.constant 0 : index
    %c0_19 = arith.constant 0 : index
    %c0_20 = arith.constant 0 : index
    %17 = vector.load %arg3[%c0_18, %c0_19, %c0_20] : memref<2x8x4xf32, #tpu.memory_space<vmem>>, vector<1x8x4xf32>
    %18 = vector.shape_cast %17 : vector<1x8x4xf32> to vector<8x4xf32>
    %c0_21 = arith.constant 0 : index
    %c1_22 = arith.constant 1 : index
    %c0_23 = arith.constant 0 : index
    %c0_24 = arith.constant 0 : index
    %19 = vector.load %arg2[%c0_21, %c1_22, %c0_23, %c0_24] : memref<2x2x4x256xf32, #tpu.memory_space<vmem>>, vector<1x1x4x256xf32>
    %20 = vector.shape_cast %19 : vector<1x1x4x256xf32> to vector<4x256xf32>
    %cst_25 = arith.constant dense<0.000000e+00> : vector<8x256xf32>
    %21 = tpu.matmul %18, %20, %cst_25 {dimension_numbers = #tpu.dot_dimension_numbers<[1], [0], [0], [1], [0, 0, 1, 1], [], []>} : vector<8x4xf32>, vector<4x256xf32>, vector<8x256xf32> -> vector<8x256xf32>
    %c1_26 = arith.constant 1 : index
    %c0_27 = arith.constant 0 : index
    %c0_28 = arith.constant 0 : index
    %22 = vector.load %arg3[%c1_26, %c0_27, %c0_28] : memref<2x8x4xf32, #tpu.memory_space<vmem>>, vector<1x8x4xf32>
    %23 = vector.shape_cast %22 : vector<1x8x4xf32> to vector<8x4xf32>
    %c1_29 = arith.constant 1 : index
    %c1_30 = arith.constant 1 : index
    %c0_31 = arith.constant 0 : index
    %c0_32 = arith.constant 0 : index
    %24 = vector.load %arg2[%c1_29, %c1_30, %c0_31, %c0_32] : memref<2x2x4x256xf32, #tpu.memory_space<vmem>>, vector<1x1x4x256xf32>
    %25 = vector.shape_cast %24 : vector<1x1x4x256xf32> to vector<4x256xf32>
    %cst_33 = arith.constant dense<0.000000e+00> : vector<8x256xf32>
    %26 = tpu.matmul %23, %25, %cst_33 {dimension_numbers = #tpu.dot_dimension_numbers<[1], [0], [0], [1], [0, 0, 1, 1], [], []>} : vector<8x4xf32>, vector<4x256xf32>, vector<8x256xf32> -> vector<8x256xf32>
    %27 = arith.addf %21, %26 : vector<8x256xf32>
    %28 = vector.broadcast %0 : vector<8x1xf32> to vector<8x256xf32>
    %29 = arith.addf %27, %28 : vector<8x256xf32>
    %c1_34 = arith.constant 1 : index
    %c0_35 = arith.constant 0 : index
    %c0_36 = arith.constant 0 : index
    %30 = vector.load %arg5[%c1_34, %c0_35, %c0_36] : memref<2x8x256xf32, #tpu.memory_space<vmem>>, vector<1x8x256xf32>
    %31 = vector.shape_cast %30 : vector<1x8x256xf32> to vector<8x256xf32>
    %32 = vector.shape_cast %29 : vector<8x256xf32> to vector<1x8x256xf32>
    tpu.vector_store %arg5[%c1_34, %c0_35, %c0_36], %32 {strides = array<i32>} : memref<2x8x256xf32, #tpu.memory_space<vmem>>, vector<1x8x256xf32>,
    return
  }
  func.func @transform_0(%arg0: i32, %arg1: i32) -> (i32, i32, i32, i32) {
    %c0_i32 = arith.constant 0 : i32
    %c0_i32_0 = arith.constant 0 : i32
    %c0_i32_1 = arith.constant 0 : i32
    return %c0_i32, %arg0, %c0_i32_0, %arg1 : i32, i32, i32, i32
  }
  func.func @transform_1(%arg0: i32, %arg1: i32) -> (i32, i32, i32) {
    %c0_i32 = arith.constant 0 : i32
    %c0_i32_0 = arith.constant 0 : i32
    %c0_i32_1 = arith.constant 0 : i32
    %c0_i32_2 = arith.constant 0 : i32
    return %c0_i32, %c0_i32_0, %c0_i32_1 : i32, i32, i32
  }
  func.func @transform_2(%arg0: i32, %arg1: i32) -> (i32, i32) {
    %c0_i32 = arith.constant 0 : i32
    %c0_i32_0 = arith.constant 0 : i32
    %c0_i32_1 = arith.constant 0 : i32
    return %c0_i32, %c0_i32_0 : i32, i32
  }
  func.func @transform_3(%arg0: i32, %arg1: i32) -> (i32, i32, i32) {
    %c0_i32 = arith.constant 0 : i32
    %c0_i32_0 = arith.constant 0 : i32
    return %arg0, %c0_i32, %arg1 : i32, i32, i32
  }
}

</mosaic_0001>

<bundles_post_ra>
// kernel: tpu_custom_call.1
= control target key start
LH: loop header
LB: loop body
LE: loop exit
PB: predicated region body
PF: predicated region fallthrough
CT: control target
= control target key end

     0   :  { %vm28_vm0 = vcmask 1043456   ;;  %v429_v4 = vmov 0.0   ;;  %vm24_vm1 = vcmask 31744   ;;  %v430_v11 = vmov 0   ;;  %s490_s0 = inlined_call_operand.vmem [shape: f32[2,2,4,256], index: 0, kind: input, shape index: {}]   ;;  %s491_s1 = inlined_call_operand.vmem [shape: f32[2,8,4], index: 1, kind: input, shape index: {}]   ;;  %s492_s2 = inlined_call_operand.vmem [shape: f32[8,1], index: 2, kind: input, shape index: {}]   ;;  %s493_s3 = inlined_call_operand.hbm [shape: f32[2,8,256], index: 3, kind: output, shape index: {}]  }
   0x1   :  { %v381_v0 = vld [vmem:[%s490_s0 + $0x10] sm:$0xff]  ;;  %v17_v1 = vld [vmem:[%s490_s0] sm:$0xff]  ;;  %97 = vmatprep.mubr.f32.mxu0 %v429_v4  ;;  %177 = vmatprep.mubr.f32.mxu1 %v429_v4  ;;  %v390_v5 = vld [vmem:[%s490_s0 + $0x18] sm:$0xff] }
   0x2   :  { %v23_v2 = vcombine.high %v381_v0, %v381_v0  ;;  %v105_v3 = vcombine.high %v17_v1, %v17_v1  ;;  %v388_v6 = vld [vmem:[%s490_s0 + $0x8] sm:$0xff]  ;;  %v16_v8 = vld [vmem:[%s491_s1] sm:$0xff]  ;;  %v200_v9 = vcombine.high %v390_v5, %v390_v5  ;;  %402 = vset.pattern.permute.xlu0 %v430_v11 }
   0x3   :  { %v380_v7 = vld [vmem:[%s491_s1 + $0x8] sm:$0xff]  ;;  %v280_v10 = vcombine.high %v388_v6, %v388_v6 }
   0x4   :  { %8 = vsyncpa [#allocation3], 0  ;;  %382 = vmatprep.subr.msk.mxu0 %vm28_vm0, %v23_v2  ;;  %385 = vmatprep.subr.msk.mxu1 %vm28_vm0, %v105_v3  ;;  %v15_v12 = vld [vmem:[%s492_s2] sm:$0xff]  ;;  %s431_s2 = smov [#allocation2]  }
   0x5   :  { %383 = vmatpush1.msk.msra.mxu0 %vm28_vm0, %v381_v0  ;;  %386 = vmatpush1.msk.msra.mxu1 %vm28_vm0, %v17_v1  ;;  %s369_s24 = sshll.u32 %s431_s2, 4  ;;  %s370_s24 = int_to_ptr.vmem [resolvable:$true] %s369_s24 }
   0x6   :  { %384 = vmatmul.mubr.msk.f32.vlgmr.msra.gmra.mxu0 %vm24_vm1, %v380_v7  ;;  %387 = vmatmul.mubr.msk.f32.vlgmr.msra.gmra.mxu1 %vm24_vm1, %v16_v8  ;;  %s407_s25 = scalar_lea.vmem %s370_s24, 512  ;;  %p412_p1 = scmp.lt.s32.totalorder %s370_s24, %s370_s24 }
   0x7   :  { %391 = vmatprep.subr.msk.mxu0 %vm28_vm0, %v200_v9  ;;  %394 = vmatprep.subr.msk.mxu1 %vm28_vm0, %v280_v10  ;;  %p408_p0 = scmp.ne.s32.totalorder %s370_s24, %s407_s25  ;;  %p413_p2 = scmp.lt.s32.totalorder %s407_s25, %s407_s25 }
   0x8   :  { %392 = vmatpush1.msk.msra.mxu0 %vm28_vm0, %v390_v5  ;;  %395 = vmatpush1.msk.msra.mxu1 %vm28_vm0, %v388_v6 }
   0x9   :  { %272 = vmatprep.mubr.f32.mxu0 %v429_v4  ;;  %352 = vmatprep.mubr.f32.mxu1 %v429_v4  ;;  %p414_p3 = por %p413_p2, %p412_p1 }
   0xa   :  { %393 = vmatmul.mubr.msk.f32.vlgmr.msra.gmra.mxu0 %vm24_vm1, %v380_v7  ;;  %396 = vmatmul.mubr.msk.f32.vlgmr.msra.gmra.mxu1 %vm24_vm1, %v16_v8 }
   0xb   :  { %186 = vperm.xlu0 %402, %v15_v12   ;;  %p415_p4 = pnand %p414_p3, %p408_p0 }
  0x86   :  { %v187_v13 = vpop.permute.xlu0 %186 }
  0xc6   :  { %v99_v14 = vpop.f32.mrf.mxu0  ;;  %v179_v15 = vpop.f32.mrf.mxu1 }
  0xc7   :  { %v180_v16 = vadd.f32 %v179_v15, %v99_v14 }
  0xc8   :  { %v101_v17 = vpop.f32.mrf.mxu0  ;;  %v181_v18 = vpop.f32.mrf.mxu1 }
  0xc9   :  { %v182_v19 = vadd.f32 %v181_v18, %v101_v17  ;;  %v189_v20 = vadd.f32 %v187_v13, %v180_v16 }
  0xca   :  { %v274_v21 = vpop.f32.mrf.mxu0  ;;  %v354_v22 = vpop.f32.mrf.mxu1 }
  0xcb   :  { %v190_v23 = vadd.f32 %v187_v13, %v182_v19  ;;  %191 = vst [vmem:[#allocation2] sm:$0xff] %v189_v20  ;;  %v355_v24 = vadd.f32 %v354_v22, %v274_v21 }
  0xcc   :  { %v276_v25 = vpop.f32.mrf.mxu0  ;;  %v356_v26 = vpop.f32.mrf.mxu1 }
  0xcd   :  { %192 = vst [vmem:[#allocation2 + $0x8] sm:$0xff] %v190_v23  ;;  %v359_v27 = vadd.f32 %v355_v24, %v187_v13  ;;  %v357_v28 = vadd.f32 %v356_v26, %v276_v25 }
  0xcf   :  { %362 = vst [vmem:[#allocation2 + $0x10] sm:$0xff] %v359_v27  ;;  %v360_v29 = vadd.f32 %v357_v28, %v187_v13 }
  0xd1   :  { %363 = vst [vmem:[#allocation2 + $0x18] sm:$0xff] %v360_v29 }
  0xd2   :  { %418 = shalt.err (!%p415_p4)
}
  0xd3   :  { %s432_s26 = smov 256   ;;  %s433_s27 = smov 16  }
  0xd4   :  { %375 = dma.vmem_to_hbm [thread:$0]  %s370_s24, 512, %s493_s3, [#allocation3], %s432_s26, %s432_s26, %s433_s27  }
  0xd5   :  { %427 = dma.done.wait [#allocation3], 512  }
  0xd6   :  { %428 = vsyncadd [#allocation3], 4294966784 }
  0xd7   :  { %379 = vsyncpa [#allocation3], 1 }

</bundles_post_ra>
